<compile_context>
chip_gen: v6e
topology: v6e:2x2x1
jax: 0.10.0
libtpu: 0.0.40
codegen_flags: <defaults>
</compile_context>

<pallas_src>
import functools

import jax
import jax.numpy as jnp
from jax.experimental import pallas as pl
from jax.experimental.pallas import tpu as pltpu


# ----------------------------- small helpers ------------------------------ #

def _round_up(n, m):
    return ((n + m - 1) // m) * m


def _pad_axis(x, target, axis):
    pad = target - x.shape[axis]
    if pad == 0:
        return x
    widths = [(0, 0)] * x.ndim
    widths[axis] = (0, pad)
    return jnp.pad(x, widths)


def _fold_bn(w, b, gamma, beta, mean, var, eps=1e-5):
    """Fold eval-mode BatchNorm1d into the preceding Linear (w: [in, out])."""
    s = gamma / jnp.sqrt(var + eps)
    return w * s[None, :], b * s + beta - mean * s


# -------------------------------- kernel ---------------------------------- #

def _dti_head_kernel(chem_ref, prot_ref, ap_ref, ap_t_ref,
                     w1c_ref, w1p_ref, s1_ref, w23_ref, s23_ref,
                     w4_ref, s4_ref, out_ref, *, approx_recip):
    f32 = jnp.float32
    cd = ap_ref.dtype                                 # compute dtype (bf16/f32)

    chem = chem_ref[...].astype(cd)                   # (tb, C)  cast in-register
    prot = prot_ref[...].astype(cd)                   # (tb, P)

    # ---- AttentivePooling on length-1 sequences ----
    # wm1 = tanh(prot @ param^T) ; wm2 = tanh(chem @ param)
    wm1 = jnp.tanh(jnp.dot(prot, ap_t_ref[...],
                           preferred_element_type=f32).astype(cd))   # (tb, C)
    wm2 = jnp.tanh(jnp.dot(chem, ap_ref[...],
                           preferred_element_type=f32).astype(cd))   # (tb, P)

    # tanh outputs are bounded in [-1, 1] -> exp needs no max-subtraction.
    e1 = jnp.exp(wm1)
    e2 = jnp.exp(wm2)
    inv1 = pl.reciprocal(jnp.sum(e1.astype(f32), axis=-1, keepdims=True),
                         approx=approx_recip)                         # (tb, 1)
    inv2 = pl.reciprocal(jnp.sum(e2.astype(f32), axis=-1, keepdims=True),
                         approx=approx_recip)
    chem_v = (e1 * inv1.astype(cd)) * chem            # rep_first   (tb, C)
    prot_v = (e2 * inv2.astype(cd)) * prot            # rep_second  (tb, P)

    # ---- interaction_pooler Linear(556->128)+BN+ReLU (BN folded) ----
    # concat([chem_v, prot_v]) @ W1 computed as a split matmul (no concat).
    h1 = jnp.dot(chem_v, w1c_ref[...], preferred_element_type=f32)
    h1 = h1 + jnp.dot(prot_v, w1p_ref[...], preferred_element_type=f32)
    h1 = jnp.maximum(h1 + s1_ref[...], 0.0).astype(cd)               # (tb, 128)

    # ---- ip Linear(128->64)+BN fused with bp Linear(64->64)+BN + ReLU ----
    h2 = jnp.dot(h1, w23_ref[...], preferred_element_type=f32)
    h2 = jnp.maximum(h2 + s23_ref[...], 0.0).astype(cd)              # (tb, 64)

    # ---- binary_predictor Linear(64->2)+BN ----
    logits = jnp.dot(h2, w4_ref[...], preferred_element_type=f32) + s4_ref[...]
    out_ref[...] = logits.astype(out_ref.dtype)


# ------------------------------- wrapper ----------------------------------- #

def dti_head_forward(chem_pooled, prot_repr, params, *,
                     compute_dtype=jnp.bfloat16, batch_tile=1024):
    """Fused DTI head.  chem_pooled: [B, C], prot_repr: [B, P] -> logits [B, 2]."""
    f32 = jnp.float32
    cd = compute_dtype
    B, C = chem_pooled.shape
    P = prot_repr.shape[1]

    ap = params["ap_param"].astype(f32)                              # [C, P]
    (w1, b1, g1, be1, m1, v1, w2, b2, g2, be2, m2, v2) = params["ip"]
    (w3, b3, g3, be3, m3, v3, w4, b4, g4, be4, m4, v4) = params["bp"]

    # Fold eval-mode BN into the Linear weights -> affine-free epilogues.
    w1f, s1 = _fold_bn(w1, b1, g1, be1, m1, v1)                      # [C+P, H1]
    w2f, s2 = _fold_bn(w2, b2, g2, be2, m2, v2)                      # [H1, O1]
    w3f, s3 = _fold_bn(w3, b3, g3, be3, m3, v3)                      # [O1, H2]
    w4f, s4 = _fold_bn(w4, b4, g4, be4, m4, v4)                      # [H2, 2]

    # Fuse ip's second Linear with bp's first Linear: dropout is identity in
    # eval mode, so there is no nonlinearity between them -> one matmul.
    w23 = w2f @ w3f                                                   # [H1, H2]
    s23 = s2 @ w3f + s3                                               # [H2]

    H1 = w1f.shape[1]
    H2, OUT = w4f.shape
    OUTp = _round_up(OUT, 128)                       # lane-dense output slab

    # Resident weights (tiny, VMEM-resident across the whole grid).
    ap_cd = ap.astype(cd)                                            # [C, P]
    ap_t = ap_cd.T                                                   # [P, C]
    w1c = w1f[:C].astype(cd)                                         # [C, H1]
    w1p = w1f[C:].astype(cd)                                         # [P, H1]
    w23c = w23.astype(cd)                                            # [H1, H2]
    w4p = _pad_axis(w4f, OUTp, 1).astype(cd)                         # [H2, OUTp]

    s1r = s1.astype(f32).reshape(1, H1)
    s23r = s23.astype(f32).reshape(1, H2)
    s4r = _pad_axis(s4.astype(f32), OUTp, 0).reshape(1, OUTp)

    # Batch tiling over the (nearly) unpadded batch axis: activations are
    # passed as-is (full last dim blocks are legal), Pallas masks edge blocks.
    Bq = _round_up(B, 8)
    if Bq != B:                                      # rare: only pads <=7 rows
        chem_pooled = _pad_axis(chem_pooled, Bq, 0)
        prot_repr = _pad_axis(prot_repr, Bq, 0)
    tb = min(batch_tile, Bq)
    if Bq >= 16 and pl.cdiv(Bq, tb) < 2:
        tb = _round_up(pl.cdiv(Bq, 2), 8)            # >=2 grid steps -> v7x megacore
    grid = (pl.cdiv(Bq, tb),)

    batch_spec = lambda f: pl.BlockSpec((tb, f), lambda i: (i, 0))
    resident = lambda a: pl.BlockSpec(a.shape, lambda i: (0,) * a.ndim)

    kernel = functools.partial(
        _dti_head_kernel,
        approx_recip=(jnp.dtype(cd) != jnp.dtype(jnp.float32)))

    out = pl.pallas_call(
        kernel,
        out_shape=jax.ShapeDtypeStruct((Bq, OUTp), cd),
        grid=grid,
        in_specs=[
            batch_spec(C), batch_spec(P),
            resident(ap_cd), resident(ap_t),
            resident(w1c), resident(w1p), resident(s1r),
            resident(w23c), resident(s23r),
            resident(w4p), resident(s4r),
        ],
        out_specs=batch_spec(OUTp),
        compiler_params=pltpu.CompilerParams(
            dimension_semantics=("parallel",),       # megacore sharding on v7x
            vmem_limit_bytes=48 * 1024 * 1024,       # fits v5e/v6e/v7x
        ),
    )(chem_pooled, prot_repr, ap_cd, ap_t, w1c, w1p, s1r, w23c, s23r, w4p, s4r)

    return out[:B, :OUT]


# ------------------------------ reference ---------------------------------- #

def _reference(chem_pooled, prot_repr, params, eps=1e-5):
    """Pure-JAX replica of the PyTorch forward (eval mode)."""
    first = chem_pooled[:, None, :]                                  # (B, 1, C)
    second = prot_repr[:, None, :]                                   # (B, 1, P)
    p = params["ap_param"]
    wm1 = jnp.tanh(jnp.einsum("blp,cp->blc", second, p))
    wm2 = jnp.tanh(jnp.einsum("blc,cp->blp", first, p))
    score1 = jax.nn.softmax(wm1, axis=2)
    score2 = jax.nn.softmax(wm2, axis=2)
    chem_v = (first * score1)[:, 0, :]
    prot_v = (second * score2)[:, 0, :]
    x = jnp.concatenate([chem_v, prot_v], axis=1)

    def embedding_transform(x, prm):
        (w1, b1, g1, be1, m1, v1, w2, b2, g2, be2, m2, v2) = prm
        h = x @ w1 + b1
        h = (h - m1) / jnp.sqrt(v1 + eps) * g1 + be1
        h = jnp.maximum(h, 0.0)
        y = h @ w2 + b2
        y = (y - m2) / jnp.sqrt(v2 + eps) * g2 + be2
        return y

    iv = embedding_transform(x, params["ip"])
    return embedding_transform(iv, params["bp"])


# --------------------------------- main ------------------------------------ #

if __name__ == "__main__":
    key = jax.random.PRNGKey(0)
    B = 8
    C = 300            # contextpred emb_dim (GNN pooled chem representation)
    P = 256            # DISAE protein embedding dim (post-resnet reshape)
    H1, O1 = 128, 64   # interaction_pooler = EmbeddingTransform(C+P, 128, 64)
    H2, OUT = 64, 2    # binary_predictor   = EmbeddingTransform(64, 64, 2)

    keys = iter(jax.random.split(key, 32))
    nk = lambda: next(keys)

    chem_pooled = jax.random.normal(nk(), (B, C), jnp.float32)
    prot_repr = jax.random.normal(nk(), (B, P), jnp.float32)

    # AttentivePooling param is zero-init in the original module; random
    # values here so the test exercises non-trivial attention scores.
    ap_param = 0.05 * jax.random.normal(nk(), (C, P), jnp.float32)

    def make_embedding_transform(in_dim, hid, out):
        w1 = 0.1 * jax.random.normal(nk(), (in_dim, hid), jnp.float32)
        b1 = 0.1 * jax.random.normal(nk(), (hid,), jnp.float32)
        g1 = 1.0 + 0.05 * jax.random.normal(nk(), (hid,), jnp.float32)
        be1 = 0.05 * jax.random.normal(nk(), (hid,), jnp.float32)
        m1 = 0.1 * jax.random.normal(nk(), (hid,), jnp.float32)
        v1 = 0.5 + jnp.abs(jax.random.normal(nk(), (hid,), jnp.float32))
        w2 = 0.1 * jax.random.normal(nk(), (hid, out), jnp.float32)
        b2 = 0.1 * jax.random.normal(nk(), (out,), jnp.float32)
        g2 = 1.0 + 0.05 * jax.random.normal(nk(), (out,), jnp.float32)
        be2 = 0.05 * jax.random.normal(nk(), (out,), jnp.float32)
        m2 = 0.1 * jax.random.normal(nk(), (out,), jnp.float32)
        v2 = 0.5 + jnp.abs(jax.random.normal(nk(), (out,), jnp.float32))
        return (w1, b1, g1, be1, m1, v1, w2, b2, g2, be2, m2, v2)

    params = {
        "ap_param": ap_param,
        "ip": make_embedding_transform(C + P, H1, O1),
        "bp": make_embedding_transform(O1, H2, OUT),
    }

    # TODO(synk): the GNN ligand encoder, DISAE/TAPE protein language model,
    # ResnetEncoderModel and to_dense_batch are external modules; their pooled
    # outputs are taken as kernel inputs. Dropout is identity and BatchNorm
    # uses running stats (eval mode).

    ref = _reference(chem_pooled, prot_repr, params)

    # f32 path: tight correctness check against the pure-JAX reference.
    out_f32 = dti_head_forward(chem_pooled, prot_repr, params,
                               compute_dtype=jnp.float32)
    jax.block_until_ready(out_f32)
    assert out_f32.shape == (B, OUT)
    assert jnp.allclose(out_f32, ref, atol=5e-3, rtol=5e-3), "f32 mismatch"

    # bf16 weights/activations/output with f32 MXU accumulation (perf path).
    out_bf16 = dti_head_forward(chem_pooled, prot_repr, params,
                                compute_dtype=jnp.bfloat16)
    jax.block_until_ready(out_bf16)
    assert out_bf16.shape == (B, OUT)
    assert jnp.allclose(out_bf16.astype(jnp.float32), ref,
                        atol=8e-2, rtol=8e-2), "bf16 mismatch"

    print("KERNEL_OK")
</pallas_src>

<mosaic_0001>
module attributes {stable_mosaic.version = 11 : i64} {
  func.func @_dti_head_kernel(%arg0: i32, %arg1: memref<8x300xf32, #tpu.memory_space<vmem>>, %arg2: memref<8x256xf32, #tpu.memory_space<vmem>>, %arg3: memref<300x256xf32, #tpu.memory_space<vmem>>, %arg4: memref<256x300xf32, #tpu.memory_space<vmem>>, %arg5: memref<300x128xf32, #tpu.memory_space<vmem>>, %arg6: memref<256x128xf32, #tpu.memory_space<vmem>>, %arg7: memref<1x128xf32, #tpu.memory_space<vmem>>, %arg8: memref<128x64xf32, #tpu.memory_space<vmem>>, %arg9: memref<1x64xf32, #tpu.memory_space<vmem>>, %arg10: memref<64x128xf32, #tpu.memory_space<vmem>>, %arg11: memref<1x128xf32, #tpu.memory_space<vmem>>, %arg12: memref<8x128xf32, #tpu.memory_space<vmem>>) attributes {dimension_semantics = [#tpu.dimension_semantics<parallel>], iteration_bounds = array<i64: 1>, scalar_prefetch = 0 : i64, scratch_operands = 0 : i64, tpu.core_type = #tpu.core_type<tc>, window_params = [{transform_indices = @transform_0, window_bounds = array<i64: 8, 300>}, {transform_indices = @transform_1, window_bounds = array<i64: 8, 256>}, {pipeline_mode = #tpu.pipeline_mode<synchronous>, transform_indices = @transform_2, window_bounds = array<i64: 300, 256>}, {pipeline_mode = #tpu.pipeline_mode<synchronous>, transform_indices = @transform_3, window_bounds = array<i64: 256, 300>}, {pipeline_mode = #tpu.pipeline_mode<synchronous>, transform_indices = @transform_4, window_bounds = array<i64: 300, 128>}, {pipeline_mode = #tpu.pipeline_mode<synchronous>, transform_indices = @transform_5, window_bounds = array<i64: 256, 128>}, {pipeline_mode = #tpu.pipeline_mode<synchronous>, transform_indices = @transform_6, window_bounds = array<i64: 1, 128>}, {pipeline_mode = #tpu.pipeline_mode<synchronous>, transform_indices = @transform_7, window_bounds = array<i64: 128, 64>}, {pipeline_mode = #tpu.pipeline_mode<synchronous>, transform_indices = @transform_8, window_bounds = array<i64: 1, 64>}, {pipeline_mode = #tpu.pipeline_mode<synchronous>, transform_indices = @transform_9, window_bounds = array<i64: 64, 128>}, {pipeline_mode = #tpu.pipeline_mode<synchronous>, transform_indices = @transform_10, window_bounds = array<i64: 1, 128>}, {transform_indices = @transform_11, window_bounds = array<i64: 8, 128>}]} {
    %c0 = arith.constant 0 : index
    %c0_0 = arith.constant 0 : index
    %0 = vector.load %arg1[%c0, %c0_0] : memref<8x300xf32, #tpu.memory_space<vmem>>, vector<8x300xf32>
    %c0_1 = arith.constant 0 : index
    %c0_2 = arith.constant 0 : index
    %1 = vector.load %arg2[%c0_1, %c0_2] : memref<8x256xf32, #tpu.memory_space<vmem>>, vector<8x256xf32>
    %c0_3 = arith.constant 0 : index
    %c0_4 = arith.constant 0 : index
    %2 = vector.load %arg4[%c0_3, %c0_4] : memref<256x300xf32, #tpu.memory_space<vmem>>, vector<256x300xf32>
    %cst = arith.constant dense<0.000000e+00> : vector<8x300xf32>
    %3 = tpu.matmul %1, %2, %cst {dimension_numbers = #tpu.dot_dimension_numbers<[1], [0], [0], [1], [0, 0, 1, 1], [], []>} : vector<8x256xf32>, vector<256x300xf32>, vector<8x300xf32> -> vector<8x300xf32>
    %4 = math.tanh %3 : vector<8x300xf32>
    %c0_5 = arith.constant 0 : index
    %c0_6 = arith.constant 0 : index
    %5 = vector.load %arg3[%c0_5, %c0_6] : memref<300x256xf32, #tpu.memory_space<vmem>>, vector<300x256xf32>
    %cst_7 = arith.constant dense<0.000000e+00> : vector<8x256xf32>
    %6 = tpu.matmul %0, %5, %cst_7 {dimension_numbers = #tpu.dot_dimension_numbers<[1], [0], [0], [1], [0, 0, 1, 1], [], []>} : vector<8x300xf32>, vector<300x256xf32>, vector<8x256xf32> -> vector<8x256xf32>
    %7 = math.tanh %6 : vector<8x256xf32>
    %8 = math.exp %4 : vector<8x300xf32>
    %9 = math.exp %7 : vector<8x256xf32>
    %cst_8 = arith.constant dense<0.000000e+00> : vector<8xf32>
    %10 = vector.multi_reduction <add>, %8, %cst_8 [1] : vector<8x300xf32> to vector<8xf32>
    %11 = vector.shape_cast %10 : vector<8xf32> to vector<8x1xf32>
    %12 = tpu.reciprocal %11 : vector<8x1xf32> -> vector<8x1xf32>
    %cst_9 = arith.constant dense<0.000000e+00> : vector<8xf32>
    %13 = vector.multi_reduction <add>, %9, %cst_9 [1] : vector<8x256xf32> to vector<8xf32>
    %14 = vector.shape_cast %13 : vector<8xf32> to vector<8x1xf32>
    %15 = tpu.reciprocal %14 : vector<8x1xf32> -> vector<8x1xf32>
    %16 = vector.broadcast %12 : vector<8x1xf32> to vector<8x300xf32>
    %17 = arith.mulf %8, %16 : vector<8x300xf32>
    %18 = arith.mulf %17, %0 : vector<8x300xf32>
    %19 = vector.broadcast %15 : vector<8x1xf32> to vector<8x256xf32>
    %20 = arith.mulf %9, %19 : vector<8x256xf32>
    %21 = arith.mulf %20, %1 : vector<8x256xf32>
    %c0_10 = arith.constant 0 : index
    %c0_11 = arith.constant 0 : index
    %22 = vector.load %arg5[%c0_10, %c0_11] : memref<300x128xf32, #tpu.memory_space<vmem>>, vector<300x128xf32>
    %cst_12 = arith.constant dense<0.000000e+00> : vector<8x128xf32>
    %23 = tpu.matmul %18, %22, %cst_12 {dimension_numbers = #tpu.dot_dimension_numbers<[1], [0], [0], [1], [0, 0, 1, 1], [], []>} : vector<8x300xf32>, vector<300x128xf32>, vector<8x128xf32> -> vector<8x128xf32>
    %c0_13 = arith.constant 0 : index
    %c0_14 = arith.constant 0 : index
    %24 = vector.load %arg6[%c0_13, %c0_14] : memref<256x128xf32, #tpu.memory_space<vmem>>, vector<256x128xf32>
    %cst_15 = arith.constant dense<0.000000e+00> : vector<8x128xf32>
    %25 = tpu.matmul %21, %24, %cst_15 {dimension_numbers = #tpu.dot_dimension_numbers<[1], [0], [0], [1], [0, 0, 1, 1], [], []>} : vector<8x256xf32>, vector<256x128xf32>, vector<8x128xf32> -> vector<8x128xf32>
    %26 = arith.addf %23, %25 : vector<8x128xf32>
    %c0_16 = arith.constant 0 : index
    %c0_17 = arith.constant 0 : index
    %27 = vector.load %arg7[%c0_16, %c0_17] : memref<1x128xf32, #tpu.memory_space<vmem>>, vector<1x128xf32>
    %28 = vector.broadcast %27 : vector<1x128xf32> to vector<8x128xf32>
    %29 = arith.addf %26, %28 : vector<8x128xf32>
    %cst_18 = arith.constant 0.000000e+00 : f32
    %30 = vector.broadcast %cst_18 : f32 to vector<8x128xf32>
    %31 = arith.maximumf %29, %30 : vector<8x128xf32>
    %c0_19 = arith.constant 0 : index
    %c0_20 = arith.constant 0 : index
    %32 = vector.load %arg8[%c0_19, %c0_20] : memref<128x64xf32, #tpu.memory_space<vmem>>, vector<128x64xf32>
    %cst_21 = arith.constant dense<0.000000e+00> : vector<8x64xf32>
    %33 = tpu.matmul %31, %32, %cst_21 {dimension_numbers = #tpu.dot_dimension_numbers<[1], [0], [0], [1], [0, 0, 1, 1], [], []>} : vector<8x128xf32>, vector<128x64xf32>, vector<8x64xf32> -> vector<8x64xf32>
    %c0_22 = arith.constant 0 : index
    %c0_23 = arith.constant 0 : index
    %34 = vector.load %arg9[%c0_22, %c0_23] : memref<1x64xf32, #tpu.memory_space<vmem>>, vector<1x64xf32>
    %35 = vector.broadcast %34 : vector<1x64xf32> to vector<8x64xf32>
    %36 = arith.addf %33, %35 : vector<8x64xf32>
    %cst_24 = arith.constant 0.000000e+00 : f32
    %37 = vector.broadcast %cst_24 : f32 to vector<8x64xf32>
    %38 = arith.maximumf %36, %37 : vector<8x64xf32>
    %c0_25 = arith.constant 0 : index
    %c0_26 = arith.constant 0 : index
    %39 = vector.load %arg10[%c0_25, %c0_26] : memref<64x128xf32, #tpu.memory_space<vmem>>, vector<64x128xf32>
    %cst_27 = arith.constant dense<0.000000e+00> : vector<8x128xf32>
    %40 = tpu.matmul %38, %39, %cst_27 {dimension_numbers = #tpu.dot_dimension_numbers<[1], [0], [0], [1], [0, 0, 1, 1], [], []>} : vector<8x64xf32>, vector<64x128xf32>, vector<8x128xf32> -> vector<8x128xf32>
    %c0_28 = arith.constant 0 : index
    %c0_29 = arith.constant 0 : index
    %41 = vector.load %arg11[%c0_28, %c0_29] : memref<1x128xf32, #tpu.memory_space<vmem>>, vector<1x128xf32>
    %42 = vector.broadcast %41 : vector<1x128xf32> to vector<8x128xf32>
    %43 = arith.addf %40, %42 : vector<8x128xf32>
    %c0_30 = arith.constant 0 : index
    %c0_31 = arith.constant 0 : index
    %44 = vector.load %arg12[%c0_30, %c0_31] : memref<8x128xf32, #tpu.memory_space<vmem>>, vector<8x128xf32>
    tpu.vector_store %arg12[%c0_30, %c0_31], %43 {strides = array<i32>} : memref<8x128xf32, #tpu.memory_space<vmem>>, vector<8x128xf32>,
    return
  }
  func.func @transform_0(%arg0: i32) -> (i32, i32) {
    %c0_i32 = arith.constant 0 : i32
    %c0_i32_0 = arith.constant 0 : i32
    return %arg0, %c0_i32 : i32, i32
  }
  func.func @transform_1(%arg0: i32) -> (i32, i32) {
    %c0_i32 = arith.constant 0 : i32
    %c0_i32_0 = arith.constant 0 : i32
    return %arg0, %c0_i32 : i32, i32
  }
  func.func @transform_2(%arg0: i32) -> (i32, i32) {
    %c0_i32 = arith.constant 0 : i32
    %c0_i32_0 = arith.constant 0 : i32
    %c0_i32_1 = arith.constant 0 : i32
    return %c0_i32, %c0_i32_0 : i32, i32
  }
  func.func @transform_3(%arg0: i32) -> (i32, i32) {
    %c0_i32 = arith.constant 0 : i32
    %c0_i32_0 = arith.constant 0 : i32
    %c0_i32_1 = arith.constant 0 : i32
    return %c0_i32, %c0_i32_0 : i32, i32
  }
  func.func @transform_4(%arg0: i32) -> (i32, i32) {
    %c0_i32 = arith.constant 0 : i32
    %c0_i32_0 = arith.constant 0 : i32
    %c0_i32_1 = arith.constant 0 : i32
    return %c0_i32, %c0_i32_0 : i32, i32
  }
  func.func @transform_5(%arg0: i32) -> (i32, i32) {
    %c0_i32 = arith.constant 0 : i32
    %c0_i32_0 = arith.constant 0 : i32
    %c0_i32_1 = arith.constant 0 : i32
    return %c0_i32, %c0_i32_0 : i32, i32
  }
  func.func @transform_6(%arg0: i32) -> (i32, i32) {
    %c0_i32 = arith.constant 0 : i32
    %c0_i32_0 = arith.constant 0 : i32
    %c0_i32_1 = arith.constant 0 : i32
    return %c0_i32, %c0_i32_0 : i32, i32
  }
  func.func @transform_7(%arg0: i32) -> (i32, i32) {
    %c0_i32 = arith.constant 0 : i32
    %c0_i32_0 = arith.constant 0 : i32
    %c0_i32_1 = arith.constant 0 : i32
    return %c0_i32, %c0_i32_0 : i32, i32
  }
  func.func @transform_8(%arg0: i32) -> (i32, i32) {
    %c0_i32 = arith.constant 0 : i32
    %c0_i32_0 = arith.constant 0 : i32
    %c0_i32_1 = arith.constant 0 : i32
    return %c0_i32, %c0_i32_0 : i32, i32
  }
  func.func @transform_9(%arg0: i32) -> (i32, i32) {
    %c0_i32 = arith.constant 0 : i32
    %c0_i32_0 = arith.constant 0 : i32
    %c0_i32_1 = arith.constant 0 : i32
    return %c0_i32, %c0_i32_0 : i32, i32
  }
  func.func @transform_10(%arg0: i32) -> (i32, i32) {
    %c0_i32 = arith.constant 0 : i32
    %c0_i32_0 = arith.constant 0 : i32
    %c0_i32_1 = arith.constant 0 : i32
    return %c0_i32, %c0_i32_0 : i32, i32
  }
  func.func @transform_11(%arg0: i32) -> (i32, i32) {
    %c0_i32 = arith.constant 0 : i32
    %c0_i32_0 = arith.constant 0 : i32
    return %arg0, %c0_i32 : i32, i32
  }
}

</mosaic_0001>

<bundles_post_ra>
// kernel: tpu_custom_call.1
= control target key start
LH: loop header
LB: loop body
LE: loop exit
PB: predicated region body
PF: predicated region fallthrough
CT: control target
= control target key end

     0   :  { %s2276_s0 = inlined_call_operand.vmem [shape: f32[8,300], index: 0, kind: input, shape index: {}]   ;;  %s2277_s1 = inlined_call_operand.vmem [shape: f32[8,256], index: 1, kind: input, shape index: {}]   ;;  %s2278_s2 = inlined_call_operand.vmem [shape: f32[300,256], index: 2, kind: input, shape index: {}]   ;;  %s2279_s3 = inlined_call_operand.vmem [shape: f32[256,300], index: 3, kind: input, shape index: {}]   ;;  %s2280_s4 = inlined_call_operand.vmem [shape: f32[300,128], index: 4, kind: input, shape index: {}]   ;;  %s2281_s5 = inlined_call_operand.vmem [shape: f32[256,128], index: 5, kind: input, shape index: {}]   ;;  %s2282_s6 = inlined_call_operand.vmem [shape: f32[1,128], index: 6, kind: input, shape index: {}]   ;;  %s2283_s7 = inlined_call_operand.vmem [shape: f32[128,64], index: 7, kind: input, shape index: {}]   ;;  %s2284_s8 = inlined_call_operand.vmem [shape: f32[1,64], index: 8, kind: input, shape index: {}]   ;;  %s2285_s9 = inlined_call_operand.vmem [shape: f32[64,128], index: 9, kind: input, shape index: {}]   ;;  %s2286_s10 = inlined_call_operand.vmem [shape: f32[1,128], index: 10, kind: input, shape index: {}]   ;;  %s2287_s11 = inlined_call_operand.hbm [shape: f32[8,128], index: 11, kind: output, shape index: {}]  }
   0x1   :  { %v90_v0 = vld [vmem:[%s2279_s3 + $0x170] sm:$0xff]  ;;  %v139_v1 = vld [vmem:[%s2279_s3 + $0x2f8] sm:$0xff]  ;;  %v89_v2 = vld [vmem:[%s2279_s3 + $0x168] sm:$0xff] }
   0x2   :  { %140 = vmatprep.subr.mxu0 %v90_v0  ;;  %1047 = vmatprep.subr.mxu1 %v139_v1  ;;  %v91_v3 = vld [vmem:[%s2279_s3 + $0x178] sm:$0xff]  ;;  %v136_v5 = vld [vmem:[%s2279_s3 + $0x2e0] sm:$0xff]  ;;  %v86_v6 = vld [vmem:[%s2279_s3 + $0x150] sm:$0xff] }
   0x3   :  { %v87_v4 = vld [vmem:[%s2279_s3 + $0x158] sm:$0xff]  ;;  %141 = vmatpush1.msra.mxu0 %v89_v2  ;;  %1048 = vmatpush3.msra.mxu1 %v91_v3  ;;  %v88_v7 = vld [vmem:[%s2279_s3 + $0x160] sm:$0xff]  ;;  %v133_v9 = vld [vmem:[%s2279_s3 + $0x2c8] sm:$0xff] }
   0x4   :  { %v84_v8 = vld [vmem:[%s2279_s3 + $0x140] sm:$0xff]  ;;  %142 = vmatprep.subr.mxu0 %v87_v4  ;;  %1049 = vmatprep.subr.mxu1 %v136_v5  ;;  %v83_v10 = vld [vmem:[%s2279_s3 + $0x138] sm:$0xff]  ;;  %v85_v11 = vld [vmem:[%s2279_s3 + $0x148] sm:$0xff] }
   0x5   :  { %143 = vmatpush1.msra.mxu0 %v86_v6  ;;  %1050 = vmatpush3.msra.mxu1 %v88_v7  ;;  %v81_v12 = vld [vmem:[%s2279_s3 + $0x128] sm:$0xff]  ;;  %v130_v13 = vld [vmem:[%s2279_s3 + $0x2b0] sm:$0xff]  ;;  %v80_v14 = vld [vmem:[%s2279_s3 + $0x120] sm:$0xff] }
   0x6   :  { %144 = vmatprep.subr.mxu0 %v84_v8  ;;  %1051 = vmatprep.subr.mxu1 %v133_v9  ;;  %v82_v15 = vld [vmem:[%s2279_s3 + $0x130] sm:$0xff]  ;;  %v127_v17 = vld [vmem:[%s2279_s3 + $0x298] sm:$0xff]  ;;  %v77_v18 = vld [vmem:[%s2279_s3 + $0x108] sm:$0xff] }
   0x7   :  { %145 = vmatpush1.msra.mxu0 %v83_v10  ;;  %1052 = vmatpush3.msra.mxu1 %v85_v11  ;;  %v78_v16 = vld [vmem:[%s2279_s3 + $0x110] sm:$0xff]  ;;  %v79_v19 = vld [vmem:[%s2279_s3 + $0x118] sm:$0xff]  ;;  %v124_v21 = vld [vmem:[%s2279_s3 + $0x280] sm:$0xff] }
   0x8   :  { %146 = vmatprep.subr.mxu0 %v81_v12  ;;  %1053 = vmatprep.subr.mxu1 %v130_v13  ;;  %v75_v20 = vld [vmem:[%s2279_s3 + $0xf8] sm:$0xff]  ;;  %v74_v22 = vld [vmem:[%s2279_s3 + $0xf0] sm:$0xff]  ;;  %v76_v23 = vld [vmem:[%s2279_s3 + $0x100] sm:$0xff] }
   0x9   :  { %147 = vmatpush1.msra.mxu0 %v80_v14  ;;  %1054 = vmatpush3.msra.mxu1 %v82_v15  ;;  %v72_v24 = vld [vmem:[%s2279_s3 + $0xe0] sm:$0xff]  ;;  %v121_v25 = vld [vmem:[%s2279_s3 + $0x268] sm:$0xff]  ;;  %v71_v26 = vld [vmem:[%s2279_s3 + $0xd8] sm:$0xff] }
   0xa   :  { %148 = vmatprep.subr.mxu0 %v78_v16  ;;  %1055 = vmatprep.subr.mxu1 %v127_v17  ;;  %v73_v27 = vld [vmem:[%s2279_s3 + $0xe8] sm:$0xff]  ;;  %v118_v29 = vld [vmem:[%s2279_s3 + $0x250] sm:$0xff]  ;;  %v68_v30 = vld [vmem:[%s2279_s3 + $0xc0] sm:$0xff] }
   0xb   :  { %149 = vmatpush1.msra.mxu0 %v77_v18  ;;  %1056 = vmatpush3.msra.mxu1 %v79_v19  ;;  %v69_v28 = vld [vmem:[%s2279_s3 + $0xc8] sm:$0xff]  ;;  %v70_v31 = vld [vmem:[%s2279_s3 + $0xd0] sm:$0xff]  ;;  %v115_v33 = vld [vmem:[%s2279_s3 + $0x238] sm:$0xff] }
   0xc   :  { %150 = vmatprep.subr.mxu0 %v75_v20  ;;  %1057 = vmatprep.subr.mxu1 %v124_v21  ;;  %v66_v32 = vld [vmem:[%s2279_s3 + $0xb0] sm:$0xff]  ;;  %v65_v34 = vld [vmem:[%s2279_s3 + $0xa8] sm:$0xff]  ;;  %v67_v35 = vld [vmem:[%s2279_s3 + $0xb8] sm:$0xff] }
   0xd   :  { %151 = vmatpush1.msra.mxu0 %v74_v22  ;;  %1058 = vmatpush3.msra.mxu1 %v76_v23  ;;  %v63_v36 = vld [vmem:[%s2279_s3 + $0x98] sm:$0xff]  ;;  %v112_v37 = vld [vmem:[%s2279_s3 + $0x220] sm:$0xff]  ;;  %v62_v38 = vld [vmem:[%s2279_s3 + $0x90] sm:$0xff] }
   0xe   :  { %152 = vmatprep.subr.mxu0 %v72_v24  ;;  %1059 = vmatprep.subr.mxu1 %v121_v25  ;;  %v64_v39 = vld [vmem:[%s2279_s3 + $0xa0] sm:$0xff]  ;;  %v109_v41 = vld [vmem:[%s2279_s3 + $0x208] sm:$0xff]  ;;  %v59_v42 = vld [vmem:[%s2279_s3 + $0x78] sm:$0xff] }
   0xf   :  { %153 = vmatpush1.msra.mxu0 %v71_v26  ;;  %1060 = vmatpush3.msra.mxu1 %v73_v27  ;;  %v60_v40 = vld [vmem:[%s2279_s3 + $0x80] sm:$0xff]  ;;  %v61_v43 = vld [vmem:[%s2279_s3 + $0x88] sm:$0xff]  ;;  %v106_v45 = vld [vmem:[%s2279_s3 + $0x1f0] sm:$0xff] }
  0x10   :  { %154 = vmatprep.subr.mxu0 %v69_v28  ;;  %1061 = vmatprep.subr.mxu1 %v118_v29  ;;  %v57_v44 = vld [vmem:[%s2279_s3 + $0x68] sm:$0xff]  ;;  %v56_v46 = vld [vmem:[%s2279_s3 + $0x60] sm:$0xff]  ;;  %v58_v47 = vld [vmem:[%s2279_s3 + $0x70] sm:$0xff] }
  0x11   :  { %155 = vmatpush1.msra.mxu0 %v68_v30  ;;  %1062 = vmatpush3.msra.mxu1 %v70_v31  ;;  %v54_v48 = vld [vmem:[%s2279_s3 + $0x50] sm:$0xff]  ;;  %v103_v49 = vld [vmem:[%s2279_s3 + $0x1d8] sm:$0xff]  ;;  %v53_v50 = vld [vmem:[%s2279_s3 + $0x48] sm:$0xff] }
  0x12   :  { %156 = vmatprep.subr.mxu0 %v66_v32  ;;  %1063 = vmatprep.subr.mxu1 %v115_v33  ;;  %v55_v51 = vld [vmem:[%s2279_s3 + $0x58] sm:$0xff]  ;;  %v100_v53 = vld [vmem:[%s2279_s3 + $0x1c0] sm:$0xff]  ;;  %v50_v54 = vld [vmem:[%s2279_s3 + $0x30] sm:$0xff] }
  0x13   :  { %157 = vmatpush1.msra.mxu0 %v65_v34  ;;  %1064 = vmatpush3.msra.mxu1 %v67_v35  ;;  %v51_v52 = vld [vmem:[%s2279_s3 + $0x38] sm:$0xff]  ;;  %v52_v55 = vld [vmem:[%s2279_s3 + $0x40] sm:$0xff]  ;;  %v97_v57 = vld [vmem:[%s2279_s3 + $0x1a8] sm:$0xff] }
  0x14   :  { %158 = vmatprep.subr.mxu0 %v63_v36  ;;  %1065 = vmatprep.subr.mxu1 %v112_v37  ;;  %v48_v56 = vld [vmem:[%s2279_s3 + $0x20] sm:$0xff]  ;;  %v47_v58 = vld [vmem:[%s2279_s3 + $0x18] sm:$0xff]  ;;  %v49_v59 = vld [vmem:[%s2279_s3 + $0x28] sm:$0xff] }
  0x15   :  { %159 = vmatpush1.msra.mxu0 %v62_v38  ;;  %1066 = vmatpush3.msra.mxu1 %v64_v39  ;;  %v45_v60 = vld [vmem:[%s2279_s3 + $0x8] sm:$0xff]  ;;  %v94_v61 = vld [vmem:[%s2279_s3 + $0x190] sm:$0xff]  ;;  %v44_v62 = vld [vmem:[%s2279_s3] sm:$0xff] }
  0x16   :  { %160 = vmatprep.subr.mxu0 %v60_v40  ;;  %1067 = vmatprep.subr.mxu1 %v109_v41  ;;  %v46_v63 = vld [vmem:[%s2279_s3 + $0x10] sm:$0xff]  ;;  %v1561_v0 = vld [vmem:[%s2277_s1 + $0x8] sm:$0xff]  ;;  %v1569_v2 = vld [vmem:[%s2277_s1] sm:$0xff] }
  0x17   :  { %161 = vmatpush1.msra.mxu0 %v59_v42  ;;  %1068 = vmatpush3.msra.mxu1 %v61_v43  ;;  %v138_v1 = vld [vmem:[%s2279_s3 + $0x2f0] sm:$0xff]  ;;  %v315_v3 = vld [vmem:[%s2278_s2 + $0xf8] sm:$0xff]  ;;  %v137_v4 = vld [vmem:[%s2279_s3 + $0x2e8] sm:$0xff] }
  0x18   :  { %162 = vmatprep.subr.mxu0 %v57_v44  ;;  %1069 = vmatprep.subr.mxu1 %v106_v45  ;;  %v314_v5 = vld [vmem:[%s2278_s2 + $0xf0] sm:$0xff]  ;;  %v135_v6 = vld [vmem:[%s2279_s3 + $0x2d8] sm:$0xff]  ;;  %v313_v7 = vld [vmem:[%s2278_s2 + $0xe8] sm:$0xff] }
  0x19   :  { %163 = vmatpush1.msra.mxu0 %v56_v46  ;;  %1070 = vmatpush3.msra.mxu1 %v58_v47  ;;  %v134_v8 = vld [vmem:[%s2279_s3 + $0x2d0] sm:$0xff]  ;;  %v312_v9 = vld [vmem:[%s2278_s2 + $0xe0] sm:$0xff]  ;;  %v311_v11 = vld [vmem:[%s2278_s2 + $0xd8] sm:$0xff] }
  0x1a   :  { %164 = vmatprep.subr.mxu0 %v54_v48  ;;  %1071 = vmatprep.subr.mxu1 %v103_v49  ;;  %v132_v10 = vld [vmem:[%s2279_s3 + $0x2c0] sm:$0xff]  ;;  %v131_v12 = vld [vmem:[%s2279_s3 + $0x2b8] sm:$0xff]  ;;  %v310_v13 = vld [vmem:[%s2278_s2 + $0xd0] sm:$0xff] }
  0x1b   :  { %165 = vmatpush1.msra.mxu0 %v53_v50  ;;  %1072 = vmatpush3.msra.mxu1 %v55_v51  ;;  %v129_v14 = vld [vmem:[%s2279_s3 + $0x2a8] sm:$0xff]  ;;  %v128_v16 = vld [vmem:[%s2279_s3 + $0x2a0] sm:$0xff]  ;;  %v126_v18 = vld [vmem:[%s2279_s3 + $0x290] sm:$0xff] }
  0x1c   :  { %166 = vmatprep.subr.mxu0 %v51_v52  ;;  %1073 = vmatprep.subr.mxu1 %v100_v53  ;;  %v309_v15 = vld [vmem:[%s2278_s2 + $0xc8] sm:$0xff]  ;;  %v308_v17 = vld [vmem:[%s2278_s2 + $0xc0] sm:$0xff]  ;;  %v307_v19 = vld [vmem:[%s2278_s2 + $0xb8] sm:$0xff] }
  0x1d   :  { %167 = vmatpush1.msra.mxu0 %v50_v54  ;;  %1074 = vmatpush3.msra.mxu1 %v52_v55  ;;  %v125_v20 = vld [vmem:[%s2279_s3 + $0x288] sm:$0xff]  ;;  %v306_v21 = vld [vmem:[%s2278_s2 + $0xb0] sm:$0xff]  ;;  %v123_v22 = vld [vmem:[%s2279_s3 + $0x278] sm:$0xff] }
  0x1e   :  { %168 = vmatprep.subr.mxu0 %v48_v56  ;;  %1075 = vmatprep.subr.mxu1 %v97_v57  ;;  %v305_v23 = vld [vmem:[%s2278_s2 + $0xa8] sm:$0xff]  ;;  %v122_v24 = vld [vmem:[%s2279_s3 + $0x270] sm:$0xff]  ;;  %v304_v25 = vld [vmem:[%s2278_s2 + $0xa0] sm:$0xff] }
  0x1f   :  { %169 = vmatpush1.msra.mxu0 %v47_v58  ;;  %1076 = vmatpush3.msra.mxu1 %v49_v59  ;;  %v120_v26 = vld [vmem:[%s2279_s3 + $0x260] sm:$0xff]  ;;  %v303_v27 = vld [vmem:[%s2278_s2 + $0x98] sm:$0xff]  ;;  %v302_v29 = vld [vmem:[%s2278_s2 + $0x90] sm:$0xff] }
  0x20   :  { %170 = vmatprep.subr.mxu0 %v45_v60  ;;  %1077 = vmatprep.subr.mxu1 %v94_v61  ;;  %v119_v28 = vld [vmem:[%s2279_s3 + $0x258] sm:$0xff]  ;;  %v117_v30 = vld [vmem:[%s2279_s3 + $0x248] sm:$0xff]  ;;  %v116_v32 = vld [vmem:[%s2279_s3 + $0x240] sm:$0xff] }
  0x21   :  { %171 = vmatpush1.msra.mxu0 %v44_v62  ;;  %1078 = vmatpush3.msra.mxu1 %v46_v63  ;;  %v301_v31 = vld [vmem:[%s2278_s2 + $0x88] sm:$0xff]  ;;  %v300_v33 = vld [vmem:[%s2278_s2 + $0x80] sm:$0xff]  ;;  %v114_v34 = vld [vmem:[%s2279_s3 + $0x230] sm:$0xff] }
  0x22   :  { %275 = vmatprep.mubr.f32.mxu1 %v1561_v0  ;;  %172 = vmatprep.subr.mxu0 %v138_v1  ;;  %v299_v35 = vld [vmem:[%s2278_s2 + $0x78] sm:$0xff]  ;;  %v113_v36 = vld [vmem:[%s2279_s3 + $0x228] sm:$0xff]  ;;  %v298_v37 = vld [vmem:[%s2278_s2 + $0x70] sm:$0xff] }
  0x23   :  { %276 = vmatmul.mubr.f32.vlgmr.msra.gmra.mxu1 %v1569_v2  ;;  %371 = vmatprep.subr.mxu1 %v315_v3  ;;  %v111_v38 = vld [vmem:[%s2279_s3 + $0x218] sm:$0xff]  ;;  %v297_v39 = vld [vmem:[%s2278_s2 + $0x68] sm:$0xff]  ;;  %v110_v40 = vld [vmem:[%s2279_s3 + $0x210] sm:$0xff] }
  0x24   :  { %173 = vmatpush2.msra.mxu0 %v137_v4  ;;  %372 = vmatpush1.msra.mxu1 %v314_v5  ;;  %v296_v41 = vld [vmem:[%s2278_s2 + $0x60] sm:$0xff]  ;;  %v295_v43 = vld [vmem:[%s2278_s2 + $0x58] sm:$0xff]  ;;  %v294_v45 = vld [vmem:[%s2278_s2 + $0x50] sm:$0xff] }
  0x25   :  { %174 = vmatprep.subr.mxu0 %v135_v6  ;;  %373 = vmatprep.subr.mxu1 %v313_v7  ;;  %v108_v42 = vld [vmem:[%s2279_s3 + $0x200] sm:$0xff]  ;;  %v107_v44 = vld [vmem:[%s2279_s3 + $0x1f8] sm:$0xff]  ;;  %v105_v46 = vld [vmem:[%s2279_s3 + $0x1e8] sm:$0xff] }
  0x26   :  { %175 = vmatpush2.msra.mxu0 %v134_v8  ;;  %374 = vmatpush1.msra.mxu1 %v312_v9  ;;  %v293_v47 = vld [vmem:[%s2278_s2 + $0x48] sm:$0xff]  ;;  %v104_v48 = vld [vmem:[%s2279_s3 + $0x1e0] sm:$0xff]  ;;  %v102_v50 = vld [vmem:[%s2279_s3 + $0x1d0] sm:$0xff] }
  0x27   :  { %176 = vmatprep.subr.mxu0 %v132_v10  ;;  %375 = vmatprep.subr.mxu1 %v311_v11  ;;  %v292_v49 = vld [vmem:[%s2278_s2 + $0x40] sm:$0xff]  ;;  %v291_v51 = vld [vmem:[%s2278_s2 + $0x38] sm:$0xff]  ;;  %v101_v52 = vld [vmem:[%s2279_s3 + $0x1c8] sm:$0xff] }
  0x28   :  { %177 = vmatpush2.msra.mxu0 %v131_v12  ;;  %376 = vmatpush1.msra.mxu1 %v310_v13  ;;  %v290_v53 = vld [vmem:[%s2278_s2 + $0x30] sm:$0xff]  ;;  %v99_v54 = vld [vmem:[%s2279_s3 + $0x1b8] sm:$0xff]  ;;  %v289_v55 = vld [vmem:[%s2278_s2 + $0x28] sm:$0xff] }
  0x29   :  { %178 = vmatprep.subr.mxu0 %v129_v14  ;;  %377 = vmatprep.subr.mxu1 %v309_v15  ;;  %v98_v56 = vld [vmem:[%s2279_s3 + $0x1b0] sm:$0xff]  ;;  %v288_v57 = vld [vmem:[%s2278_s2 + $0x20] sm:$0xff]  ;;  %v287_v59 = vld [vmem:[%s2278_s2 + $0x18] sm:$0xff] }
  0x2a   :  { %179 = vmatpush2.msra.mxu0 %v128_v16  ;;  %378 = vmatpush1.msra.mxu1 %v308_v17  ;;  %v96_v58 = vld [vmem:[%s2279_s3 + $0x1a0] sm:$0xff] }
  0x2b   :  { %180 = vmatprep.subr.mxu0 %v126_v18  ;;  %379 = vmatprep.subr.mxu1 %v307_v19 }
  0x2c   :  { %181 = vmatpush2.msra.mxu0 %v125_v20  ;;  %380 = vmatpush1.msra.mxu1 %v306_v21 }
  0x2d   :  { %182 = vmatprep.subr.mxu0 %v123_v22  ;;  %381 = vmatprep.subr.mxu1 %v305_v23 }
  0x2e   :  { %183 = vmatpush2.msra.mxu0 %v122_v24  ;;  %382 = vmatpush1.msra.mxu1 %v304_v25 }
  0x2f   :  { %184 = vmatprep.subr.mxu0 %v120_v26  ;;  %383 = vmatprep.subr.mxu1 %v303_v27 }
  0x30   :  { %185 = vmatpush2.msra.mxu0 %v119_v28  ;;  %384 = vmatpush1.msra.mxu1 %v302_v29 }
  0x31   :  { %186 = vmatprep.subr.mxu0 %v117_v30  ;;  %385 = vmatprep.subr.mxu1 %v301_v31 }
  0x32   :  { %187 = vmatpush2.msra.mxu0 %v116_v32  ;;  %386 = vmatpush1.msra.mxu1 %v300_v33 }
  0x33   :  { %188 = vmatprep.subr.mxu0 %v114_v34  ;;  %387 = vmatprep.subr.mxu1 %v299_v35 }
  0x34   :  { %189 = vmatpush2.msra.mxu0 %v113_v36  ;;  %388 = vmatpush1.msra.mxu1 %v298_v37 }
  0x35   :  { %190 = vmatprep.subr.mxu0 %v111_v38  ;;  %389 = vmatprep.subr.mxu1 %v297_v39 }
  0x36   :  { %191 = vmatpush2.msra.mxu0 %v110_v40  ;;  %390 = vmatpush1.msra.mxu1 %v296_v41 }
  0x37   :  { %192 = vmatprep.subr.mxu0 %v108_v42  ;;  %391 = vmatprep.subr.mxu1 %v295_v43 }
  0x38   :  { %193 = vmatpush2.msra.mxu0 %v107_v44  ;;  %392 = vmatpush1.msra.mxu1 %v294_v45 }
  0x39   :  { %194 = vmatprep.subr.mxu0 %v105_v46  ;;  %393 = vmatprep.subr.mxu1 %v293_v47 }
  0x3a   :  { %195 = vmatpush2.msra.mxu0 %v104_v48  ;;  %394 = vmatpush1.msra.mxu1 %v292_v49 }
  0x3b   :  { %196 = vmatprep.subr.mxu0 %v102_v50  ;;  %395 = vmatprep.subr.mxu1 %v291_v51 }
  0x3c   :  { %197 = vmatpush2.msra.mxu0 %v101_v52  ;;  %396 = vmatpush1.msra.mxu1 %v290_v53 }
  0x3d   :  { %16 = vsyncpa [#allocation3], 0  ;;  %198 = vmatprep.subr.mxu0 %v99_v54  ;;  %397 = vmatprep.subr.mxu1 %v289_v55  ;;  %v95_v60 = vld [vmem:[%s2279_s3 + $0x198] sm:$0xff]  ;;  %v286_v61 = vld [vmem:[%s2278_s2 + $0x10] sm:$0xff]  ;;  %vm364_vm0 = vcmask 1043456   ;;  %vm360_vm1 = vcmask 359424  }
  0x3e   :  { %199 = vmatpush2.msra.mxu0 %v98_v56  ;;  %398 = vmatpush1.msra.mxu1 %v288_v57  ;;  %v93_v62 = vld [vmem:[%s2279_s3 + $0x188] sm:$0xff]  ;;  %v92_v1 = vld [vmem:[%s2279_s3 + $0x180] sm:$0xff]  ;;  %v347_v4 = vld [vmem:[%s2278_s2 + $0x1f8] sm:$0xff]  ;;  %v1303_v34 = vmov 0.0   ;;  %vm1304_vm2 = vmmov 0   ;;  %vm949_vm3 = vcmask 523264  }
  0x3f   :  { %v285_v63 = vld [vmem:[%s2278_s2 + $0x8] sm:$0xff]  ;;  %200 = vmatprep.subr.mxu0 %v96_v58  ;;  %399 = vmatprep.subr.mxu1 %v287_v59  ;;  %v284_v3 = vld [vmem:[%s2278_s2] sm:$0xff]  ;;  %v359_v5 = vld [vmem:[%s2278_s2 + $0x258] sm:$0xf]  ;;  %s1305_s16 = smov [#allocation2]  }
  0x40   :  { %201 = vmatpush2.msra.mxu0 %v95_v60  ;;  %400 = vmatpush1.msra.mxu1 %v286_v61  ;;  %v346_v6 = vld [vmem:[%s2278_s2 + $0x1f0] sm:$0xff]  ;;  %v345_v8 = vld [vmem:[%s2278_s2 + $0x1e8] sm:$0xff]  ;;  %v344_v10 = vld [vmem:[%s2278_s2 + $0x1e0] sm:$0xff]  ;;  %s1030_s17 = sshll.u32 %s1305_s16, 4  ;;  %s1031_s17 = int_to_ptr.vmem [resolvable:$true] %s1030_s17 }
  0x41   :  { %202 = vmatprep.subr.mxu0 %v93_v62  ;;  %401 = vmatprep.subr.mxu1 %v285_v63  ;;  %v358_v7 = vld [vmem:[%s2278_s2 + $0x250] sm:$0xf]  ;;  %v357_v9 = vld [vmem:[%s2278_s2 + $0x248] sm:$0xff]  ;;  %v356_v11 = vld [vmem:[%s2278_s2 + $0x240] sm:$0xff]  ;;  %p1286_p1 = scmp.lt.s32.totalorder %s1031_s17, %s1031_s17 }
  0x42   :  { %203 = vmatpush2.msra.mxu0 %v92_v1  ;;  %204 = vmatprep.mubr.f32.mxu0 %v1561_v0  ;;  %v343_v12 = vld [vmem:[%s2278_s2 + $0x1d8] sm:$0xff]  ;;  %v342_v14 = vld [vmem:[%s2278_s2 + $0x1d0] sm:$0xff]  ;;  %v341_v16 = vld [vmem:[%s2278_s2 + $0x1c8] sm:$0xff] }
  0x43   :  { %402 = vmatpush1.msra.mxu1 %v284_v3  ;;  %205 = vmatmul.mubr.f32.vlgmr.msra.gmra.mxu0 %v1569_v2  ;;  %v355_v13 = vld [vmem:[%s2278_s2 + $0x238] sm:$0xff]  ;;  %v354_v15 = vld [vmem:[%s2278_s2 + $0x230] sm:$0xff]  ;;  %v353_v17 = vld [vmem:[%s2278_s2 + $0x228] sm:$0xff] }
  0x44   :  { %403 = vmatprep.subr.mxu1 %v347_v4  ;;  %1038 = vmatprep.subr.msk.mxu0 %vm364_vm0, %v359_v5  ;;  %v340_v18 = vld [vmem:[%s2278_s2 + $0x1c0] sm:$0xff]  ;;  %v339_v20 = vld [vmem:[%s2278_s2 + $0x1b8] sm:$0xff]  ;;  %v338_v22 = vld [vmem:[%s2278_s2 + $0x1b0] sm:$0xff] }
  0x45   :  { %404 = vmatpush2.msra.mxu1 %v346_v6  ;;  %1039 = vmatpush1.msk.msra.mxu0 %vm364_vm0, %v358_v7  ;;  %v352_v19 = vld [vmem:[%s2278_s2 + $0x220] sm:$0xff]  ;;  %v351_v21 = vld [vmem:[%s2278_s2 + $0x218] sm:$0xff]  ;;  %v350_v23 = vld [vmem:[%s2278_s2 + $0x210] sm:$0xff] }
  0x46   :  { %405 = vmatprep.subr.mxu1 %v345_v8  ;;  %464 = vmatprep.subr.mxu0 %v357_v9  ;;  %v337_v24 = vld [vmem:[%s2278_s2 + $0x1a8] sm:$0xff]  ;;  %v336_v26 = vld [vmem:[%s2278_s2 + $0x1a0] sm:$0xff]  ;;  %v335_v28 = vld [vmem:[%s2278_s2 + $0x198] sm:$0xff] }
  0x47   :  { %406 = vmatpush2.msra.mxu1 %v344_v10  ;;  %465 = vmatpush1.msra.mxu0 %v356_v11  ;;  %v349_v25 = vld [vmem:[%s2278_s2 + $0x208] sm:$0xff]  ;;  %v348_v27 = vld [vmem:[%s2278_s2 + $0x200] sm:$0xff]  ;;  %v334_v29 = vld [vmem:[%s2278_s2 + $0x190] sm:$0xff] }
  0x48   :  { %407 = vmatprep.subr.mxu1 %v343_v12  ;;  %466 = vmatprep.subr.mxu0 %v355_v13  ;;  %v1847_v30 = vld [vmem:[%s2276_s0 + $0x10] sm:$0xff]  ;;  %v333_v31 = vld [vmem:[%s2278_s2 + $0x188] sm:$0xff]  ;;  %v332_v33 = vld [vmem:[%s2278_s2 + $0x180] sm:$0xff] }
  0x49   :  { %408 = vmatpush2.msra.mxu1 %v342_v14  ;;  %467 = vmatpush1.msra.mxu0 %v354_v15  ;;  %v1855_v32 = vld [vmem:[%s2276_s0 + $0x8] sm:$0xff]  ;;  %v331_v35 = vld [vmem:[%s2278_s2 + $0x178] sm:$0xff]  ;;  %v330_v36 = vld [vmem:[%s2278_s2 + $0x170] sm:$0xff] }
  0x4a   :  { %409 = vmatprep.subr.mxu1 %v341_v16  ;;  %468 = vmatprep.subr.mxu0 %v353_v17  ;;  %v329_v37 = vld [vmem:[%s2278_s2 + $0x168] sm:$0xff]  ;;  %v328_v38 = vld [vmem:[%s2278_s2 + $0x160] sm:$0xff]  ;;  %v327_v39 = vld [vmem:[%s2278_s2 + $0x158] sm:$0xff] }
  0x4b   :  { %410 = vmatpush2.msra.mxu1 %v340_v18  ;;  %469 = vmatpush1.msra.mxu0 %v352_v19  ;;  %v326_v40 = vld [vmem:[%s2278_s2 + $0x150] sm:$0xff]  ;;  %v325_v41 = vld [vmem:[%s2278_s2 + $0x148] sm:$0xff]  ;;  %v324_v42 = vld [vmem:[%s2278_s2 + $0x140] sm:$0xff] }
  0x4c   :  { %411 = vmatprep.subr.mxu1 %v339_v20  ;;  %470 = vmatprep.subr.mxu0 %v351_v21  ;;  %v323_v43 = vld [vmem:[%s2278_s2 + $0x138] sm:$0xff]  ;;  %v322_v44 = vld [vmem:[%s2278_s2 + $0x130] sm:$0xff]  ;;  %v321_v45 = vld [vmem:[%s2278_s2 + $0x128] sm:$0xff] }
  0x4d   :  { %412 = vmatpush2.msra.mxu1 %v338_v22  ;;  %471 = vmatpush1.msra.mxu0 %v350_v23  ;;  %v320_v46 = vld [vmem:[%s2278_s2 + $0x120] sm:$0xff]  ;;  %v319_v47 = vld [vmem:[%s2278_s2 + $0x118] sm:$0xff]  ;;  %v318_v48 = vld [vmem:[%s2278_s2 + $0x110] sm:$0xff] }
  0x4e   :  { %413 = vmatprep.subr.mxu1 %v337_v24  ;;  %472 = vmatprep.subr.mxu0 %v349_v25  ;;  %v317_v49 = vld [vmem:[%s2278_s2 + $0x108] sm:$0xff]  ;;  %v316_v50 = vld [vmem:[%s2278_s2 + $0x100] sm:$0xff]  ;;  %v614_v52 = vld [vmem:[%s2281_s5 + $0xf8] sm:$0xff] }
  0x4f   :  { %414 = vmatpush2.msra.mxu1 %v336_v26  ;;  %473 = vmatpush1.msra.mxu0 %v348_v27  ;;  %v1915_v51 = vld [vmem:[%s2276_s0] sm:$0xff]  ;;  %v598_v53 = vld [vmem:[%s2281_s5 + $0x78] sm:$0xff]  ;;  %v613_v54 = vld [vmem:[%s2281_s5 + $0xf0] sm:$0xff] }
  0x50   :  { %415 = vmatprep.subr.mxu1 %v335_v28  ;;  %506 = vmatprep.mubr.f32.mxu0 %v1303_v34  ;;  %v597_v55 = vld [vmem:[%s2281_s5 + $0x70] sm:$0xff]  ;;  %v612_v56 = vld [vmem:[%s2281_s5 + $0xe8] sm:$0xff]  ;;  %v576_v57 = vld [vmem:[%s2280_s4 + $0xf8] sm:$0xff] }
  0x51   :  { %416 = vmatpush2.msra.mxu1 %v334_v29  ;;  %1040 = vmatmul.mubr.msk.f32.vlgmr.msra.gmra.mxu0 %vm360_vm1, %v1847_v30  ;;  %v560_v58 = vld [vmem:[%s2280_s4 + $0x78] sm:$0xff]  ;;  %v596_v59 = vld [vmem:[%s2281_s5 + $0x68] sm:$0xff]  ;;  %v575_v60 = vld [vmem:[%s2280_s4 + $0xf0] sm:$0xff] }
  0x52   :  { %417 = vmatprep.subr.mxu1 %v333_v31  ;;  %435 = vmatprep.mubr.f32.mxu1 %v1855_v32  ;;  %v611_v61 = vld [vmem:[%s2281_s5 + $0xe0] sm:$0xff]  ;;  %v559_v62 = vld [vmem:[%s2280_s4 + $0x70] sm:$0xff]  ;;  %v574_v63 = vld [vmem:[%s2280_s4 + $0xe8] sm:$0xff] }
  0x53   :  { %418 = vmatpush2.msra.mxu1 %v332_v33  ;;  %1082 = vmatprep.subr.mxu0 %v614_v52  ;;  %v595_v1 = vld [vmem:[%s2281_s5 + $0x60] sm:$0xff]  ;;  %v558_v3 = vld [vmem:[%s2280_s4 + $0x68] sm:$0xff]  ;;  %v610_v4 = vld [vmem:[%s2281_s5 + $0xd8] sm:$0xff] }
  0x54   :  { %419 = vmatprep.subr.mxu1 %v331_v35  ;;  %1083 = vmatpush3.msra.mxu0 %v598_v53  ;;  %v573_v5 = vld [vmem:[%s2280_s4 + $0xe0] sm:$0xff]  ;;  %v594_v6 = vld [vmem:[%s2281_s5 + $0x58] sm:$0xff]  ;;  %v609_v8 = vld [vmem:[%s2281_s5 + $0xd0] sm:$0xff] }
  0x55   :  { %420 = vmatpush2.msra.mxu1 %v330_v36  ;;  %1084 = vmatprep.subr.mxu0 %v613_v54  ;;  %v557_v7 = vld [vmem:[%s2280_s4 + $0x60] sm:$0xff]  ;;  %v572_v9 = vld [vmem:[%s2280_s4 + $0xd8] sm:$0xff]  ;;  %v593_v10 = vld [vmem:[%s2281_s5 + $0x50] sm:$0xff] }
  0x56   :  { %421 = vmatprep.subr.mxu1 %v329_v37  ;;  %1085 = vmatpush3.msra.mxu0 %v597_v55  ;;  %v608_v11 = vld [vmem:[%s2281_s5 + $0xc8] sm:$0xff]  ;;  %v555_v52 = vld [vmem:[%s2280_s4 + $0x50] sm:$0xff]  ;;  %v590_v53 = vld [vmem:[%s2281_s5 + $0x38] sm:$0xff] }
  0x57   :  { %422 = vmatpush2.msra.mxu1 %v328_v38  ;;  %1086 = vmatprep.subr.mxu0 %v612_v56  ;;  %v592_v12 = vld [vmem:[%s2281_s5 + $0x48] sm:$0xff]  ;;  %v605_v55 = vld [vmem:[%s2281_s5 + $0xb0] sm:$0xff] }
  0x58   :  { %423 = vmatprep.subr.mxu1 %v327_v39  ;;  %1087 = vmatpush3.msra.mxu0 %v596_v59  ;;  %v570_v54 = vld [vmem:[%s2280_s4 + $0xc8] sm:$0xff] }
  0x59   :  { %424 = vmatpush2.msra.mxu1 %v326_v40  ;;  %1088 = vmatprep.subr.mxu0 %v611_v61  ;;  %v554_v56 = vld [vmem:[%s2280_s4 + $0x48] sm:$0xff] }
  0x5a   :  { %425 = vmatprep.subr.mxu1 %v325_v41  ;;  %1089 = vmatpush3.msra.mxu0 %v595_v1  ;;  %v604_v59 = vld [vmem:[%s2281_s5 + $0xa8] sm:$0xff]  ;;  %v552_v1 = vld [vmem:[%s2280_s4 + $0x38] sm:$0xff] }
  0x5b   :  { %426 = vmatpush2.msra.mxu1 %v324_v42  ;;  %1090 = vmatprep.subr.mxu0 %v610_v4  ;;  %v588_v61 = vld [vmem:[%s2281_s5 + $0x28] sm:$0xff]  ;;  %v567_v4 = vld [vmem:[%s2280_s4 + $0xb0] sm:$0xff] }
  0x5c   :  { %427 = vmatprep.subr.mxu1 %v323_v43  ;;  %1091 = vmatpush3.msra.mxu0 %v594_v6  ;;  %v551_v6 = vld [vmem:[%s2280_s4 + $0x30] sm:$0xff] }
  0x5d   :  { %428 = vmatpush2.msra.mxu1 %v322_v44  ;;  %1092 = vmatprep.subr.mxu0 %v609_v8  ;;  %v566_v8 = vld [vmem:[%s2280_s4 + $0xa8] sm:$0xff] }
  0x5e   :  { %429 = vmatprep.subr.mxu1 %v321_v45  ;;  %1093 = vmatpush3.msra.mxu0 %v593_v10  ;;  %v550_v10 = vld [vmem:[%s2280_s4 + $0x28] sm:$0xff] }
  0x5f   :  { %430 = vmatpush2.msra.mxu1 %v320_v46  ;;  %1094 = vmatprep.subr.mxu0 %v608_v11  ;;  %v607_v46 = vld [vmem:[%s2281_s5 + $0xc0] sm:$0xff]  ;;  %v585_v11 = vld [vmem:[%s2281_s5 + $0x10] sm:$0xff] }
  0x60   :  { %431 = vmatprep.subr.mxu1 %v319_v47  ;;  %1095 = vmatpush3.msra.mxu0 %v592_v12  ;;  %v556_v47 = vld [vmem:[%s2280_s4 + $0x58] sm:$0xff]  ;;  %v565_v12 = vld [vmem:[%s2280_s4 + $0xa0] sm:$0xff] }
  0x61   :  { %432 = vmatpush2.msra.mxu1 %v318_v48  ;;  %1096 = vmatprep.subr.mxu0 %v607_v46  ;;  %v591_v48 = vld [vmem:[%s2281_s5 + $0x40] sm:$0xff]  ;;  %v855_v46 = vld [vmem:[%s2283_s7 + $0x78] sm:$0xff] }
  0x62   :  { %433 = vmatprep.subr.mxu1 %v317_v49  ;;  %v571_v49 = vld [vmem:[%s2280_s4 + $0xd0] sm:$0xff]  ;;  %1097 = vmatpush3.msra.mxu0 %v591_v48  ;;  %v851_v48 = vld [vmem:[%s2283_s7 + $0x58] sm:$0xff] }
  0x63   :  { %434 = vmatpush2.msra.mxu1 %v316_v50  ;;  %v606_v50 = vld [vmem:[%s2281_s5 + $0xb8] sm:$0xff] }
  0x64   :  { %436 = vmatmul.mubr.f32.vlgmr.msra.gmra.mxu1 %v1915_v51  ;;  %1117 = vmatprep.subr.mxu1 %v576_v57  ;;  %v589_v57 = vld [vmem:[%s2281_s5 + $0x30] sm:$0xff] }
  0x65   :  { %1118 = vmatpush3.msra.mxu1 %v560_v58  ;;  %1098 = vmatprep.subr.mxu0 %v606_v50  ;;  %v569_v58 = vld [vmem:[%s2280_s4 + $0xc0] sm:$0xff]  ;;  %v849_v50 = vld [vmem:[%s2283_s7 + $0x48] sm:$0xff] }
  0x66   :  { %1119 = vmatprep.subr.mxu1 %v575_v60  ;;  %1099 = vmatpush3.msra.mxu0 %v590_v53  ;;  %v553_v60 = vld [vmem:[%s2280_s4 + $0x40] sm:$0xff]  ;;  %v847_v53 = vld [vmem:[%s2283_s7 + $0x38] sm:$0xff] }
  0x67   :  { %1120 = vmatpush3.msra.mxu1 %v559_v62  ;;  %1100 = vmatprep.subr.mxu0 %v605_v55  ;;  %v568_v62 = vld [vmem:[%s2280_s4 + $0xb8] sm:$0xff]  ;;  %v845_v55 = vld [vmem:[%s2283_s7 + $0x28] sm:$0xff] }
  0x68   :  { %1121 = vmatprep.subr.mxu1 %v574_v63  ;;  %1101 = vmatpush3.msra.mxu0 %v589_v57  ;;  %v603_v63 = vld [vmem:[%s2281_s5 + $0xa0] sm:$0xff]  ;;  %v843_v57 = vld [vmem:[%s2283_s7 + $0x18] sm:$0xff] }
  0x69   :  { %1122 = vmatpush3.msra.mxu1 %v558_v3  ;;  %1102 = vmatprep.subr.mxu0 %v604_v59  ;;  %v587_v3 = vld [vmem:[%s2281_s5 + $0x20] sm:$0xff]  ;;  %v841_v59 = vld [vmem:[%s2283_s7 + $0x8] sm:$0xff] }
  0x6a   :  { %1123 = vmatprep.subr.mxu1 %v573_v5  ;;  %1103 = vmatpush3.msra.mxu0 %v588_v61  ;;  %v602_v5 = vld [vmem:[%s2281_s5 + $0x98] sm:$0xff] }
  0x6b   :  { %1124 = vmatpush3.msra.mxu1 %v557_v7  ;;  %1104 = vmatprep.subr.mxu0 %v603_v63  ;;  %v586_v7 = vld [vmem:[%s2281_s5 + $0x18] sm:$0xff]  ;;  %v939_v63 = vld [vmem:[%s2285_s9 + $0x28] sm:$0xff] }
  0x6c   :  { %1125 = vmatprep.subr.mxu1 %v572_v9  ;;  %1105 = vmatpush3.msra.mxu0 %v587_v3  ;;  %v601_v9 = vld [vmem:[%s2281_s5 + $0x90] sm:$0xff]  ;;  %v941_v61 = vld [vmem:[%s2285_s9 + $0x38] sm:$0xff] }
  0x6d   :  { %1126 = vmatpush3.msra.mxu1 %v556_v47  ;;  %1106 = vmatprep.subr.mxu0 %v602_v5  ;;  %v852_v47 = vld [vmem:[%s2283_s7 + $0x60] sm:$0xff]  ;;  %v937_v3 = vld [vmem:[%s2285_s9 + $0x18] sm:$0xff] }
  0x6e   :  { %1127 = vmatprep.subr.mxu1 %v571_v49  ;;  %1107 = vmatpush3.msra.mxu0 %v586_v7  ;;  %v850_v49 = vld [vmem:[%s2283_s7 + $0x50] sm:$0xff] }
  0x6f   :  { %1128 = vmatpush3.msra.mxu1 %v555_v52  ;;  %1108 = vmatprep.subr.mxu0 %v601_v9  ;;  %v848_v52 = vld [vmem:[%s2283_s7 + $0x40] sm:$0xff] }
  0x70   :  { %1129 = vmatprep.subr.mxu1 %v570_v54  ;;  %1109 = vmatpush3.msra.mxu0 %v585_v11  ;;  %v846_v54 = vld [vmem:[%s2283_s7 + $0x30] sm:$0xff] }
  0x71   :  { %1130 = vmatpush3.msra.mxu1 %v554_v56  ;;  %v844_v56 = vld [vmem:[%s2283_s7 + $0x20] sm:$0xff] }
  0x72   :  { %1131 = vmatprep.subr.mxu1 %v569_v58  ;;  %v842_v58 = vld [vmem:[%s2283_s7 + $0x10] sm:$0xff] }
  0x73   :  { %1132 = vmatpush3.msra.mxu1 %v553_v60  ;;  %v840_v60 = vld [vmem:[%s2283_s7] sm:$0xff] }
  0x74   :  { %1133 = vmatprep.subr.mxu1 %v568_v62  ;;  %v940_v62 = vld [vmem:[%s2285_s9 + $0x30] sm:$0xff] }
  0x75   :  { %1134 = vmatpush3.msra.mxu1 %v552_v1  ;;  %v938_v1 = vld [vmem:[%s2285_s9 + $0x20] sm:$0xff] }
  0x76   :  { %1135 = vmatprep.subr.mxu1 %v567_v4 }
  0x77   :  { %1136 = vmatpush3.msra.mxu1 %v551_v6 }
  0x78   :  { %1137 = vmatprep.subr.mxu1 %v566_v8 }
  0x79   :  { %1138 = vmatpush3.msra.mxu1 %v550_v10 }
  0x7a   :  { %1139 = vmatprep.subr.mxu1 %v565_v12  ;;  %v1043_v12 = vld [vmem:[%s2282_s6] ss:$0 sm:$0xff] }
  0xe3   :  { %v1079_v13 = vpop.f32.mrf.mxu1 }
  0xe5   :  { %v1080_v15 = vpop.f32.mrf.mxu1 }
  0xe6   :  { %v1081_v17 = vadd.f32 %v1080_v15, %v1079_v13  ;;  %v600_v13 = vld [vmem:[%s2281_s5 + $0x88] sm:$0xff] }
  0xe7   :  { %v584_v15 = vld [vmem:[%s2281_s5 + $0x8] sm:$0xff]  ;;  %1110 = vmatprep.subr.mxu0 %v600_v13 }
  0xe8   :  { %1111 = vmatpush3.msra.mxu0 %v584_v15 }
 0x103   :  { %v206_v14 = vpop.f32.mrf.mxu0 }
 0x104   :  { %1257 = vtanh.f32 %v206_v14  ;;  %v549_v14 = vld [vmem:[%s2280_s4 + $0x20] sm:$0xff] }
 0x105   :  { %v208_v16 = vpop.f32.mrf.mxu0  ;;  %1140 = vmatpush3.msra.mxu1 %v549_v14 }
 0x106   :  { %1259 = vtanh.f32 %v208_v16  ;;  %v564_v16 = vld [vmem:[%s2280_s4 + $0x98] sm:$0xff] }
 0x107   :  { %1261 = vtanh.f32 %v1081_v17  ;;  %v599_v17 = vld [vmem:[%s2281_s5 + $0x80] sm:$0xff]  ;;  %1141 = vmatprep.subr.mxu1 %v564_v16 }
 0x108   :  { %1112 = vmatprep.subr.mxu0 %v599_v17  ;;  %v936_v17 = vld [vmem:[%s2285_s9 + $0x10] sm:$0xff] }
 0x111   :  { %v508_v18 = vpop.f32.mrf.mxu0  ;;  %v1258_v24 = vpop.eup %1257 }
 0x112   :  { %v515_v26 = vmul.f32 1.442695, %v1258_v24  ;;  %v561_v24 = vld [vmem:[%s2280_s4 + $0x80] sm:$0xff] }
 0x113   :  { %v510_v21 = vpop.f32.mrf.mxu0  ;;  %v1260_v25 = vpop.eup %1259 }
 0x114   :  { %v1262_v27 = vpop.eup %1261  ;;  %v517_v28 = vmul.f32 1.442695, %v1260_v25  ;;  %v545_v25 = vld [vmem:[%s2280_s4] sm:$0xff] }
 0x115   :  { %v519_v35 = vmul.f32 1.442695, %v1262_v27 }
 0x124   :  { %v437_v19 = vpop.f32.mrf.mxu1 }
 0x125   :  { %v509_v20 = vadd.f32 %v508_v18, %v437_v19  ;;  %v548_v18 = vld [vmem:[%s2280_s4 + $0x18] sm:$0xff]  ;;  %v583_v19 = vld [vmem:[%s2281_s5] sm:$0xff] }
 0x126   :  { %v439_v22 = vpop.f32.mrf.mxu1  ;;  %1142 = vmatpush3.msra.mxu1 %v548_v18  ;;  %1113 = vmatpush3.msra.mxu0 %v583_v19  ;;  %v935_v18 = vld [vmem:[%s2285_s9 + $0x8] sm:$0xff]  ;;  %v934_v19 = vld [vmem:[%s2285_s9] sm:$0xff]  ;;  %s1281_s9 = scalar_lea.vmem %s1031_s17, 128 }
 0x127   :  { %1263 = vtanh.f32 %v509_v20  ;;  %v511_v23 = vadd.f32 %v510_v21, %v439_v22  ;;  %v563_v20 = vld [vmem:[%s2280_s4 + $0x90] sm:$0xff]  ;;  %1185 = vmatprep.subr.mxu0 %v1303_v34  ;;  %v562_v22 = vld [vmem:[%s2280_s4 + $0x88] sm:$0xff]  ;;  %p1282_p0 = scmp.ne.s32.totalorder %s1031_s17, %s1281_s9  ;;  %p1287_p2 = scmp.lt.s32.totalorder %s1281_s9, %s1281_s9 }
 0x128   :  { %1143 = vmatprep.subr.mxu1 %v563_v20  ;;  %v547_v21 = vld [vmem:[%s2280_s4 + $0x10] sm:$0xff]  ;;  %v1044_v20 = vld [vmem:[%s2284_s8] ss:$0 sm:$0xff] }
 0x129   :  { %1265 = vtanh.f32 %v511_v23  ;;  %1144 = vmatpush3.msra.mxu1 %v547_v21  ;;  %v546_v23 = vld [vmem:[%s2280_s4 + $0x8] sm:$0xff]  ;;  %p1288_p3 = por %p1287_p2, %p1286_p1 }
 0x12a   :  { %1267 = vpow2.f32 %v515_v26  ;;  %1145 = vmatprep.subr.mxu1 %v562_v22 }
 0x12b   :  { %1269 = vpow2.f32 %v517_v28  ;;  %1146 = vmatpush3.msra.mxu1 %v546_v23  ;;  %p1289_p4 = pnand %p1288_p3, %p1282_p0 }
 0x12c   :  { %1147 = vmatprep.subr.mxu1 %v561_v24 }
 0x12d   :  { %1148 = vmatpush3.msra.mxu1 %v545_v25  ;;  %v1045_v25 = vld [vmem:[%s2286_s10] ss:$0 sm:$0xff] }
 0x12e   :  { %1235 = vmatprep.subr.mxu1 %v1303_v34 }
 0x134   :  { %v1264_v29 = vpop.eup %1263 }
 0x135   :  { %v521_v31 = vmul.f32 1.442695, %v1264_v29 }
 0x136   :  { %v1266_v33 = vpop.eup %1265 }
 0x137   :  { %v523_v36 = vmul.f32 1.442695, %v1266_v33  ;;  %1271 = vpow2.f32 %v521_v31  ;;  %v1987_v37 = vpop.eup %1267 }
 0x138   :  { %v1989_v38 = vpop.eup %1269 }
 0x139   :  { %1273 = vpow2.f32 %v523_v36  ;;  %v525_v43 = vadd.f32 %v1989_v38, %v1987_v37 }
 0x13a   :  { %1275 = vpow2.f32 %v519_v35 }
 0x144   :  { %v1991_v39 = vpop.eup %1271 }
 0x146   :  { %v1993_v40 = vpop.eup %1273 }
 0x147   :  { %v1995_v41 = vpop.eup %1275  ;;  %v531_v42 = vadd.f32 %v1993_v40, %v1991_v39 }
 0x148   :  { %v526_v44 = vsel %vm360_vm1, %v1995_v41, 0.0 }
 0x149   :  { %532 = vadd.xlane.f32.xlu0 %v531_v42  ;;  %v527_v45 = vadd.f32 %v526_v44, %v525_v43  ;;  %v582_v42 = vld [vmem:[%s2280_s4 + $0x128] sm:$0xf] }
 0x14d   :  { %528 = vadd.xlane.f32.xlu0 %v527_v45 }
 0x1d2   :  { %v533_v26 = vpop.xlane.xlu0 %532 }
 0x1d3   :  { %1277 = vrcp.f32 %v533_v26 }
 0x1d6   :  { %v529_v27 = vpop.xlane.xlu0 %528 }
 0x1d7   :  { %1279 = vrcp.f32 %v529_v27 }
 0x1e0   :  { %v1278_v28 = vpop.eup %1277 }
 0x1e1   :  { %v542_v29 = vmul.f32 %v1278_v28, %v1993_v40  ;;  %v541_v31 = vmul.f32 %v1278_v28, %v1991_v39  ;;  %v581_v40 = vld [vmem:[%s2280_s4 + $0x120] sm:$0xff] }
 0x1e2   :  { %v577_v39 = vld [vmem:[%s2280_s4 + $0x100] sm:$0xff] }
 0x1e3   :  { %v544_v33 = vmul.f32 %v542_v29, %v1561_v0  ;;  %v543_v35 = vmul.f32 %v541_v31, %v1569_v2 }
 0x1e4   :  { %v1280_v36 = vpop.eup %1279 }
 0x1e5   :  { %679 = vmatprep.mubr.f32.mxu0 %v544_v33  ;;  %v536_v43 = vmul.f32 %v1280_v36, %v1989_v38  ;;  %v535_v44 = vmul.f32 %v1280_v36, %v1987_v37  ;;  %v580_v37 = vld [vmem:[%s2280_s4 + $0x118] sm:$0xff]  ;;  %v537_v38 = vmul.f32 %v1280_v36, %v1995_v41  ;;  %v854_v41 = vld [vmem:[%s2283_s7 + $0x70] sm:$0xff] }
 0x1e6   :  { %680 = vmatmul.mubr.f32.vlgmr.msra.gmra.mxu0 %v543_v35 }
 0x1e7   :  { %1186 = vmatpush3.msk.msra.mxu0 %vm364_vm0, %v582_v42  ;;  %v539_v0 = vmul.f32 %v536_v43, %v1855_v32  ;;  %v538_v2 = vmul.f32 %v535_v44, %v1915_v51  ;;  %1197 = vmatprep.mubr.msk.f32.mxu0 %vm1304_vm2, %v1303_v34  ;;  %v579_v32 = vld [vmem:[%s2280_s4 + $0x110] sm:$0xff]  ;;  %v578_v51 = vld [vmem:[%s2280_s4 + $0x108] sm:$0xff]  ;;  %v540_v45 = vmul.f32 %v537_v38, %v1847_v30 }
 0x1e8   :  { %1187 = vmatprep.subr.mxu0 %v1303_v34  ;;  %v853_v30 = vld [vmem:[%s2283_s7 + $0x68] sm:$0xff] }
 0x1e9   :  { %1188 = vmatpush3.msra.mxu0 %v581_v40  ;;  %755 = vmatprep.mubr.f32.mxu1 %v539_v0 }
 0x1ea   :  { %1189 = vmatprep.subr.mxu0 %v1303_v34  ;;  %756 = vmatmul.mubr.f32.vlgmr.msra.gmra.mxu1 %v538_v2 }
 0x1eb   :  { %1190 = vmatpush3.msra.mxu0 %v580_v37  ;;  %1251 = vmatprep.mubr.msk.f32.mxu1 %vm1304_vm2, %v1303_v34 }
 0x1ec   :  { %1191 = vmatprep.subr.mxu0 %v1303_v34  ;;  %1236 = vmatpush3.msra.mxu1 %v941_v61 }
 0x1ed   :  { %1192 = vmatpush3.msra.mxu0 %v579_v32  ;;  %1237 = vmatprep.subr.mxu1 %v1303_v34 }
 0x1ee   :  { %1193 = vmatprep.subr.mxu0 %v1303_v34  ;;  %1238 = vmatpush3.msra.mxu1 %v940_v62 }
 0x1ef   :  { %1194 = vmatpush3.msra.mxu0 %v578_v51  ;;  %1239 = vmatprep.subr.mxu1 %v1303_v34 }
 0x1f0   :  { %1195 = vmatprep.subr.mxu0 %v1303_v34  ;;  %1240 = vmatpush3.msra.mxu1 %v939_v63 }
 0x1f1   :  { %1196 = vmatpush3.msra.mxu0 %v577_v39  ;;  %1241 = vmatprep.subr.mxu1 %v1303_v34 }
 0x1f2   :  { %1198 = vmatmul.mubr.msk.f32.vlgmr.msra.gmra.mxu0 %vm360_vm1, %v540_v45  ;;  %1200 = vmatprep.subr.mxu0 %v1303_v34 }
 0x1f3   :  { %1201 = vmatpush3.msra.mxu0 %v855_v46  ;;  %1232 = vmatprep.mubr.msk.f32.mxu0 %vm1304_vm2, %v1303_v34 }
 0x1f4   :  { %1202 = vmatprep.subr.mxu0 %v1303_v34  ;;  %1242 = vmatpush3.msra.mxu1 %v938_v1 }
 0x1f5   :  { %1203 = vmatpush3.msra.mxu0 %v854_v41  ;;  %1243 = vmatprep.subr.mxu1 %v1303_v34 }
 0x1f6   :  { %1204 = vmatprep.subr.mxu0 %v1303_v34  ;;  %1244 = vmatpush3.msra.mxu1 %v937_v3 }
 0x1f7   :  { %1205 = vmatpush3.msra.mxu0 %v853_v30  ;;  %1245 = vmatprep.subr.mxu1 %v1303_v34 }
 0x1f8   :  { %1206 = vmatprep.subr.mxu0 %v1303_v34  ;;  %1246 = vmatpush3.msra.mxu1 %v936_v17 }
 0x1f9   :  { %1207 = vmatpush3.msra.mxu0 %v852_v47  ;;  %1247 = vmatprep.subr.mxu1 %v1303_v34 }
 0x1fa   :  { %1208 = vmatprep.subr.mxu0 %v1303_v34  ;;  %1248 = vmatpush3.msra.mxu1 %v935_v18 }
 0x1fb   :  { %1209 = vmatpush3.msra.mxu0 %v851_v48  ;;  %1249 = vmatprep.subr.mxu1 %v1303_v34 }
 0x1fc   :  { %1210 = vmatprep.subr.mxu0 %v1303_v34  ;;  %1250 = vmatpush3.msra.mxu1 %v934_v19 }
 0x1fd   :  { %1211 = vmatpush3.msra.mxu0 %v850_v49 }
 0x1fe   :  { %1212 = vmatprep.subr.mxu0 %v1303_v34 }
 0x1ff   :  { %1213 = vmatpush3.msra.mxu0 %v849_v50 }
 0x200   :  { %1214 = vmatprep.subr.mxu0 %v1303_v34 }
 0x201   :  { %1215 = vmatpush3.msra.mxu0 %v848_v52 }
 0x202   :  { %1216 = vmatprep.subr.mxu0 %v1303_v34 }
 0x203   :  { %1217 = vmatpush3.msra.mxu0 %v847_v53 }
 0x204   :  { %1218 = vmatprep.subr.mxu0 %v1303_v34 }
 0x205   :  { %1219 = vmatpush3.msra.mxu0 %v846_v54 }
 0x206   :  { %1220 = vmatprep.subr.mxu0 %v1303_v34 }
 0x207   :  { %1221 = vmatpush3.msra.mxu0 %v845_v55 }
 0x208   :  { %1222 = vmatprep.subr.mxu0 %v1303_v34 }
 0x209   :  { %1223 = vmatpush3.msra.mxu0 %v844_v56 }
 0x20a   :  { %1224 = vmatprep.subr.mxu0 %v1303_v34 }
 0x20b   :  { %1225 = vmatpush3.msra.mxu0 %v843_v57 }
 0x20c   :  { %1226 = vmatprep.subr.mxu0 %v1303_v34 }
 0x20d   :  { %1227 = vmatpush3.msra.mxu0 %v842_v58 }
 0x20e   :  { %1228 = vmatprep.subr.mxu0 %v1303_v34 }
 0x20f   :  { %1229 = vmatpush3.msra.mxu0 %v841_v59 }
 0x210   :  { %1230 = vmatprep.subr.mxu0 %v1303_v34 }
 0x211   :  { %1231 = vmatpush3.msra.mxu0 %v840_v60 }
 0x2a6   :  { %v1114_v4 = vpop.f32.mrf.mxu0 }
 0x2a8   :  { %v1115_v5 = vpop.f32.mrf.mxu0 }
 0x2a9   :  { %v1116_v8 = vadd.f32 %v1115_v5, %v1114_v4 }
 0x2aa   :  { %v1149_v6 = vpop.f32.mrf.mxu1 }
 0x2ac   :  { %v1150_v7 = vpop.f32.mrf.mxu1 }
 0x2ad   :  { %v1151_v9 = vadd.f32 %v1150_v7, %v1149_v6 }
 0x2af   :  { %v758_v10 = vadd.f32 %v1151_v9, %v1116_v8 }
 0x2b2   :  { %v827_v11 = vpop.f32.mrf.mxu0 }
 0x2b3   :  { %v828_v13 = vadd.f32 %v827_v11, %v758_v10 }
 0x2b4   :  { %v1199_v14 = vpop.f32.mrf.mxu0 }
 0x2b5   :  { %v838_v15 = vadd.f32 %v1043_v12, %v828_v13 }
 0x2b7   :  { %v839_v16 = vmax.f32 %v838_v15, 0.0 }
 0x2b9   :  { %1233 = vmatmul.mubr.f32.vlgmr.msra.gmra.mxu0 %v839_v16 }
 0x379   :  { %v929_v21 = vpop.f32.mrf.mxu0 }
 0x37a   :  { %v930_v22 = vadd.f32 %v1044_v20, %v929_v21 }
 0x37b   :  { %v1234_v23 = vpop.f32.mrf.mxu0 }
 0x37c   :  { %v933_v24 = vmax.f32 %v930_v22, 0.0 }
 0x37e   :  { %1252 = vmatmul.mubr.msk.f32.vlgmr.msra.gmra.mxu1 %vm949_vm3, %v933_v24 }
 0x43e   :  { %v1019_v34 = vpop.f32.mrf.mxu1 }
 0x43f   :  { %v1020_v26 = vadd.f32 %v1045_v25, %v1019_v34 }
 0x440   :  { %v1253_v27 = vpop.f32.mrf.mxu1 }
 0x441   :  { %1023 = vst [vmem:[#allocation2] sm:$0xff] %v1020_v26 }
 0x442   :  { %1292 = shalt.err (!%p1289_p4)
}
 0x443   :  { %1033 = dma.vmem_to_hbm [thread:$0]  %s1031_s17, 128, %s2287_s11, [#allocation3]  }
 0x444   :  { %1301 = dma.done.wait [#allocation3], 128  }
 0x445   :  { %1302 = vsyncadd [#allocation3], 4294967168 }
 0x446   :  { %1037 = vsyncpa [#allocation3], 1 }

</bundles_post_ra>
